<compile_context>
chip_gen: v7x
topology: tpu7x:2x2x1
jax: 0.10.0
libtpu: 0.0.40
codegen_flags: <defaults>
</compile_context>

<pallas_src>
import jax
import jax.numpy as jnp
from jax.experimental import pallas as pl
from jax.experimental.pallas import tpu as pltpu


def _round_up(n, m):
    return ((n + m - 1) // m) * m


def q_critic_kernel(s_ref, a_ref, w1s_ref, w1a_ref, b1_ref,
                    w2_ref, b2_ref, w3_ref, b3_ref, q_ref):
    # Layer 1: concat folded into two MXU matmuls + bias + ReLU.
    # MXU operands in bf16 (weights already stored bf16), f32 accumulation.
    s = s_ref[...].astype(w1s_ref.dtype)
    a = a_ref[...].astype(w1a_ref.dtype)
    h1 = jnp.dot(s, w1s_ref[...], preferred_element_type=jnp.float32)
    h1 = h1 + jnp.dot(a, w1a_ref[...], preferred_element_type=jnp.float32)
    h1 = jnp.maximum(h1 + b1_ref[...], 0.0)                       # f32 VPU

    # Layer 2: Linear(net_width -> 300 [padded to 384]) + ReLU.
    h2 = jnp.dot(h1.astype(w2_ref.dtype), w2_ref[...],
                 preferred_element_type=jnp.float32)
    h2 = jnp.maximum(h2 + b2_ref[...], 0.0)                       # f32 VPU

    # Layer 3: Linear(300 -> 1).  N=1 matmul wastes the MXU, so do it on the
    # VPU (elementwise mul) + XLU (lane reduction) instead, all in f32.
    q = jnp.sum(h2 * w3_ref[...], axis=-1, keepdims=True) + b3_ref[...]
    q_ref[...] = q.astype(q_ref.dtype)


def _choose_batch_block(B, batch_block):
    """Default 256 (multiple of 128: MXU-friendly on all generations, bounded
    VMEM, multi-step grid for pipelining / megacore).  bb < B is forced to a
    multiple of 8 to satisfy the (8, 128) BlockSpec constraint."""
    bb = 256 if batch_block is None else int(batch_block)
    bb = min(bb, B)
    if bb >= B:
        return B                       # single block: full-dim, no constraint
    return max(8, (bb // 8) * 8)


def q_critic_forward(state, action, kparams, *, batch_block=None):
    """state: [B, state_dim] f32, action: [B, action_dim] f32.

    kparams come from prepare_q_critic_params; they carry a leading critic
    axis C (C=1 for a single critic).  Returns [B, 1] if C == 1 else
    [C, B, 1].
    """
    B, S = state.shape
    A = action.shape[1]
    w1_s, w1_a, b1 = kparams["w1_s"], kparams["w1_a"], kparams["b1"]
    w2, b2, w3, b3 = kparams["w2"], kparams["b2"], kparams["w3"], kparams["b3"]
    C = w1_s.shape[0]     # number of stacked critics
    Wp = w1_s.shape[2]    # padded net_width
    Hp = w2.shape[2]      # padded hidden (300 -> 384)

    bb = _choose_batch_block(B, batch_block)
    B_pad = _round_up(B, bb)
    if B_pad != B:
        pad = ((0, B_pad - B), (0, 0))
        state = jnp.pad(state, pad)
        action = jnp.pad(action, pad)

    grid = (C, B_pad // bb)   # innermost axis streams batch tiles

    def wspec(shape):
        # Grid-invariant (per-critic) weight/bias block; critic dim squeezed.
        return pl.BlockSpec((None,) + shape, lambda c, i: (c, 0, 0))

    out = pl.pallas_call(
        q_critic_kernel,
        out_shape=jax.ShapeDtypeStruct((C, B_pad, 1), jnp.float32),
        grid=grid,
        in_specs=[
            pl.BlockSpec((bb, S), lambda c, i: (i, 0)),   # state (batch-tiled)
            pl.BlockSpec((bb, A), lambda c, i: (i, 0)),   # action (batch-tiled)
            wspec((S, Wp)),                               # w1_s (bf16)
            wspec((A, Wp)),                               # w1_a (bf16)
            wspec((1, Wp)),                               # b1   (f32)
            wspec((Wp, Hp)),                              # w2   (bf16)
            wspec((1, Hp)),                               # b2   (f32)
            wspec((1, Hp)),                               # w3 row (f32)
            wspec((1, 1)),                                # b3   (f32)
        ],
        out_specs=pl.BlockSpec((None, bb, 1), lambda c, i: (c, i, 0)),
        compiler_params=pltpu.CompilerParams(
            dimension_semantics=("parallel", "parallel"),
            vmem_limit_bytes=32 * 1024 * 1024),
    )(state, action, w1_s, w1_a, b1, w2, b2, w3, b3)

    out = out[:, :B, :]
    return out[0] if C == 1 else out


def init_q_critic_params(key, state_dim, action_dim, net_width):
    """Deterministic init mimicking torch.nn.Linear U(-1/sqrt(fan_in), +...).

    Standard (unpadded, unsplit) layout: w [in, out], b [1, out].
    """
    def linear(key, fan_in, fan_out):
        kw, kb = jax.random.split(key)
        bound = 1.0 / jnp.sqrt(jnp.float32(fan_in))
        w = jax.random.uniform(kw, (fan_in, fan_out), jnp.float32,
                               minval=-bound, maxval=bound)
        b = jax.random.uniform(kb, (1, fan_out), jnp.float32,
                               minval=-bound, maxval=bound)
        return w, b

    k1, k2, k3 = jax.random.split(key, 3)
    w1, b1 = linear(k1, state_dim + action_dim, net_width)
    w2, b2 = linear(k2, net_width, 300)
    w3, b3 = linear(k3, 300, 1)
    return {"w1": w1, "b1": b1, "w2": w2, "b2": b2, "w3": w3, "b3": b3}


def _prepare_one(p, state_dim, Wp, Hp, mx_dtype):
    w1, b1 = p["w1"], p["b1"]
    w2, b2 = p["w2"], p["b2"]
    w3, b3 = p["w3"], p["b3"]
    W, H = w1.shape[1], w2.shape[1]
    pad_cols = lambda x, n: jnp.pad(x, ((0, 0), (0, n - x.shape[1])))
    return {
        "w1_s": pad_cols(w1[:state_dim], Wp).astype(mx_dtype),
        "w1_a": pad_cols(w1[state_dim:], Wp).astype(mx_dtype),
        "b1":   pad_cols(b1, Wp),
        "w2":   jnp.pad(w2, ((0, Wp - W), (0, Hp - H))).astype(mx_dtype),
        "b2":   pad_cols(b2, Hp),
        "w3":   pad_cols(w3.T, Hp),          # [1, Hp], kept f32
        "b3":   b3.reshape(1, 1),
    }


def prepare_q_critic_params(params, state_dim, *, use_bf16=True):
    """One-time param prep for the kernel.

    `params` is a single param dict (one critic) or a list of dicts (e.g. TD3
    twin critics / online+target) -> fused into ONE pallas_call via a leading
    critic axis C.  Matmul weights are split (state/action), zero-padded to
    lane-dense widths (exact: ReLU(0+0)=0, padded w2/w3 entries are zero) and
    optionally cast to bf16 for the MXU; biases and w3 stay f32.
    """
    plist = [params] if isinstance(params, dict) else list(params)
    W = plist[0]["w1"].shape[1]
    H = plist[0]["w2"].shape[1]
    Wp = _round_up(W, 128)
    Hp = _round_up(H, 128)
    mx_dtype = jnp.bfloat16 if use_bf16 else jnp.float32
    per = [_prepare_one(p, state_dim, Wp, Hp, mx_dtype) for p in plist]
    return {k: jnp.stack([d[k] for d in per], axis=0) for k in per[0]}


def q_critic_reference(state, action, params):
    sa = jnp.concatenate([state, action], axis=1)
    h1 = jax.nn.relu(sa @ params["w1"] + params["b1"])
    h2 = jax.nn.relu(h1 @ params["w2"] + params["b2"])
    return h2 @ params["w3"] + params["b3"]


if __name__ == "__main__":
    batch, state_dim, action_dim, net_width = 8, 24, 8, 32

    key = jax.random.PRNGKey(0)
    k_state, k_action, k_p1, k_p2 = jax.random.split(key, 4)

    state = jax.random.normal(k_state, (batch, state_dim), jnp.float32)
    action = jax.random.normal(k_action, (batch, action_dim), jnp.float32)

    # Single critic (matches the PyTorch module's forward exactly).
    params = init_q_critic_params(k_p1, state_dim, action_dim, net_width)
    kparams = prepare_q_critic_params(params, state_dim)
    q = jax.jit(q_critic_forward)(state, action, kparams)
    jax.block_until_ready(q)

    q_ref = q_critic_reference(state, action, params)
    assert q.shape == (batch, 1), q.shape
    # bf16 MXU operands with f32 accumulation -> slightly looser tolerance.
    assert jnp.allclose(q, q_ref, atol=5e-2, rtol=5e-2), (
        "Pallas output mismatch vs JAX reference")

    # Fused twin-critic evaluation (one pallas_call, amortizes launch overhead
    # at small RL batch sizes).
    params2 = init_q_critic_params(k_p2, state_dim, action_dim, net_width)
    kparams_tw = prepare_q_critic_params([params, params2], state_dim)
    q12 = jax.jit(q_critic_forward)(state, action, kparams_tw)
    jax.block_until_ready(q12)
    q2_ref = q_critic_reference(state, action, params2)
    assert q12.shape == (2, batch, 1), q12.shape
    assert jnp.allclose(q12[0], q_ref, atol=5e-2, rtol=5e-2)
    assert jnp.allclose(q12[1], q2_ref, atol=5e-2, rtol=5e-2)

    print("KERNEL_OK")
</pallas_src>

<mosaic_0001>
module attributes {stable_mosaic.version = 11 : i64} {
  func.func @q_critic_kernel(%arg0: i32, %arg1: i32, %arg2: memref<8x24xf32, #tpu.memory_space<vmem>>, %arg3: memref<8x8xf32, #tpu.memory_space<vmem>>, %arg4: memref<1x24x128xbf16, #tpu.memory_space<vmem>>, %arg5: memref<1x8x128xbf16, #tpu.memory_space<vmem>>, %arg6: memref<1x1x128xf32, #tpu.memory_space<vmem>>, %arg7: memref<1x128x384xbf16, #tpu.memory_space<vmem>>, %arg8: memref<1x1x384xf32, #tpu.memory_space<vmem>>, %arg9: memref<1x1x384xf32, #tpu.memory_space<vmem>>, %arg10: memref<1x1x1xf32, #tpu.memory_space<vmem>>, %arg11: memref<1x8x1xf32, #tpu.memory_space<vmem>>) attributes {dimension_semantics = [#tpu.dimension_semantics<parallel>, #tpu.dimension_semantics<parallel>], iteration_bounds = array<i64: 1, 1>, scalar_prefetch = 0 : i64, scratch_operands = 0 : i64, tpu.core_type = #tpu.core_type<tc>, window_params = [{transform_indices = @transform_0, window_bounds = array<i64: 8, 24>}, {transform_indices = @transform_1, window_bounds = array<i64: 8, 8>}, {transform_indices = @transform_2, window_bounds = array<i64: 1, 24, 128>}, {transform_indices = @transform_3, window_bounds = array<i64: 1, 8, 128>}, {transform_indices = @transform_4, window_bounds = array<i64: 1, 1, 128>}, {transform_indices = @transform_5, window_bounds = array<i64: 1, 128, 384>}, {transform_indices = @transform_6, window_bounds = array<i64: 1, 1, 384>}, {transform_indices = @transform_7, window_bounds = array<i64: 1, 1, 384>}, {transform_indices = @transform_8, window_bounds = array<i64: 1, 1, 1>}, {transform_indices = @transform_9, window_bounds = array<i64: 1, 8, 1>}]} {
    %c0 = arith.constant 0 : index
    %c0_0 = arith.constant 0 : index
    %0 = vector.load %arg2[%c0, %c0_0] : memref<8x24xf32, #tpu.memory_space<vmem>>, vector<8x24xf32>
    %1 = arith.truncf %0 : vector<8x24xf32> to vector<8x24xbf16>
    %c0_1 = arith.constant 0 : index
    %c0_2 = arith.constant 0 : index
    %2 = vector.load %arg3[%c0_1, %c0_2] : memref<8x8xf32, #tpu.memory_space<vmem>>, vector<8x8xf32>
    %3 = arith.truncf %2 : vector<8x8xf32> to vector<8x8xbf16>
    %c0_3 = arith.constant 0 : index
    %c0_4 = arith.constant 0 : index
    %c0_5 = arith.constant 0 : index
    %4 = vector.load %arg4[%c0_3, %c0_4, %c0_5] : memref<1x24x128xbf16, #tpu.memory_space<vmem>>, vector<1x24x128xbf16>
    %5 = vector.shape_cast %4 : vector<1x24x128xbf16> to vector<24x128xbf16>
    %cst = arith.constant dense<0.000000e+00> : vector<8x128xf32>
    %6 = tpu.matmul %1, %5, %cst {dimension_numbers = #tpu.dot_dimension_numbers<[1], [0], [0], [1], [0, 0, 1, 1], [], []>} : vector<8x24xbf16>, vector<24x128xbf16>, vector<8x128xf32> -> vector<8x128xf32>
    %c0_6 = arith.constant 0 : index
    %c0_7 = arith.constant 0 : index
    %c0_8 = arith.constant 0 : index
    %7 = vector.load %arg5[%c0_6, %c0_7, %c0_8] : memref<1x8x128xbf16, #tpu.memory_space<vmem>>, vector<1x8x128xbf16>
    %8 = vector.shape_cast %7 : vector<1x8x128xbf16> to vector<8x128xbf16>
    %cst_9 = arith.constant dense<0.000000e+00> : vector<8x128xf32>
    %9 = tpu.matmul %3, %8, %cst_9 {dimension_numbers = #tpu.dot_dimension_numbers<[1], [0], [0], [1], [0, 0, 1, 1], [], []>} : vector<8x8xbf16>, vector<8x128xbf16>, vector<8x128xf32> -> vector<8x128xf32>
    %10 = arith.addf %6, %9 : vector<8x128xf32>
    %c0_10 = arith.constant 0 : index
    %c0_11 = arith.constant 0 : index
    %c0_12 = arith.constant 0 : index
    %11 = vector.load %arg6[%c0_10, %c0_11, %c0_12] : memref<1x1x128xf32, #tpu.memory_space<vmem>>, vector<1x1x128xf32>
    %12 = vector.shape_cast %11 : vector<1x1x128xf32> to vector<1x128xf32>
    %13 = vector.broadcast %12 : vector<1x128xf32> to vector<8x128xf32>
    %14 = arith.addf %10, %13 : vector<8x128xf32>
    %cst_13 = arith.constant 0.000000e+00 : f32
    %15 = vector.broadcast %cst_13 : f32 to vector<8x128xf32>
    %16 = arith.maximumf %14, %15 : vector<8x128xf32>
    %17 = arith.truncf %16 : vector<8x128xf32> to vector<8x128xbf16>
    %c0_14 = arith.constant 0 : index
    %c0_15 = arith.constant 0 : index
    %c0_16 = arith.constant 0 : index
    %18 = vector.load %arg7[%c0_14, %c0_15, %c0_16] : memref<1x128x384xbf16, #tpu.memory_space<vmem>>, vector<1x128x384xbf16>
    %19 = vector.shape_cast %18 : vector<1x128x384xbf16> to vector<128x384xbf16>
    %cst_17 = arith.constant dense<0.000000e+00> : vector<8x384xf32>
    %20 = tpu.matmul %17, %19, %cst_17 {dimension_numbers = #tpu.dot_dimension_numbers<[1], [0], [0], [1], [0, 0, 1, 1], [], []>} : vector<8x128xbf16>, vector<128x384xbf16>, vector<8x384xf32> -> vector<8x384xf32>
    %c0_18 = arith.constant 0 : index
    %c0_19 = arith.constant 0 : index
    %c0_20 = arith.constant 0 : index
    %21 = vector.load %arg8[%c0_18, %c0_19, %c0_20] : memref<1x1x384xf32, #tpu.memory_space<vmem>>, vector<1x1x384xf32>
    %22 = vector.shape_cast %21 : vector<1x1x384xf32> to vector<1x384xf32>
    %23 = vector.broadcast %22 : vector<1x384xf32> to vector<8x384xf32>
    %24 = arith.addf %20, %23 : vector<8x384xf32>
    %cst_21 = arith.constant 0.000000e+00 : f32
    %25 = vector.broadcast %cst_21 : f32 to vector<8x384xf32>
    %26 = arith.maximumf %24, %25 : vector<8x384xf32>
    %c0_22 = arith.constant 0 : index
    %c0_23 = arith.constant 0 : index
    %c0_24 = arith.constant 0 : index
    %27 = vector.load %arg9[%c0_22, %c0_23, %c0_24] : memref<1x1x384xf32, #tpu.memory_space<vmem>>, vector<1x1x384xf32>
    %28 = vector.shape_cast %27 : vector<1x1x384xf32> to vector<1x384xf32>
    %29 = vector.broadcast %28 : vector<1x384xf32> to vector<8x384xf32>
    %30 = arith.mulf %26, %29 : vector<8x384xf32>
    %cst_25 = arith.constant dense<0.000000e+00> : vector<8xf32>
    %31 = vector.multi_reduction <add>, %30, %cst_25 [1] : vector<8x384xf32> to vector<8xf32>
    %32 = vector.shape_cast %31 : vector<8xf32> to vector<8x1xf32>
    %c0_26 = arith.constant 0 : index
    %c0_27 = arith.constant 0 : index
    %c0_28 = arith.constant 0 : index
    %33 = vector.load %arg10[%c0_26, %c0_27, %c0_28] : memref<1x1x1xf32, #tpu.memory_space<vmem>>, vector<1x1x1xf32>
    %34 = vector.shape_cast %33 : vector<1x1x1xf32> to vector<1x1xf32>
    %35 = vector.broadcast %34 : vector<1x1xf32> to vector<8x1xf32>
    %36 = arith.addf %32, %35 : vector<8x1xf32>
    %c0_29 = arith.constant 0 : index
    %c0_30 = arith.constant 0 : index
    %c0_31 = arith.constant 0 : index
    %37 = vector.load %arg11[%c0_29, %c0_30, %c0_31] : memref<1x8x1xf32, #tpu.memory_space<vmem>>, vector<1x8x1xf32>
    %38 = vector.shape_cast %37 : vector<1x8x1xf32> to vector<8x1xf32>
    %39 = vector.shape_cast %36 : vector<8x1xf32> to vector<1x8x1xf32>
    tpu.vector_store %arg11[%c0_29, %c0_30, %c0_31], %39 {strides = array<i32>} : memref<1x8x1xf32, #tpu.memory_space<vmem>>, vector<1x8x1xf32>,
    return
  }
  func.func @transform_0(%arg0: i32, %arg1: i32) -> (i32, i32) {
    %c0_i32 = arith.constant 0 : i32
    %c0_i32_0 = arith.constant 0 : i32
    return %arg1, %c0_i32 : i32, i32
  }
  func.func @transform_1(%arg0: i32, %arg1: i32) -> (i32, i32) {
    %c0_i32 = arith.constant 0 : i32
    %c0_i32_0 = arith.constant 0 : i32
    return %arg1, %c0_i32 : i32, i32
  }
  func.func @transform_2(%arg0: i32, %arg1: i32) -> (i32, i32, i32) {
    %c0_i32 = arith.constant 0 : i32
    %c0_i32_0 = arith.constant 0 : i32
    %c0_i32_1 = arith.constant 0 : i32
    return %arg0, %c0_i32, %c0_i32_0 : i32, i32, i32
  }
  func.func @transform_3(%arg0: i32, %arg1: i32) -> (i32, i32, i32) {
    %c0_i32 = arith.constant 0 : i32
    %c0_i32_0 = arith.constant 0 : i32
    %c0_i32_1 = arith.constant 0 : i32
    return %arg0, %c0_i32, %c0_i32_0 : i32, i32, i32
  }
  func.func @transform_4(%arg0: i32, %arg1: i32) -> (i32, i32, i32) {
    %c0_i32 = arith.constant 0 : i32
    %c0_i32_0 = arith.constant 0 : i32
    %c0_i32_1 = arith.constant 0 : i32
    return %arg0, %c0_i32, %c0_i32_0 : i32, i32, i32
  }
  func.func @transform_5(%arg0: i32, %arg1: i32) -> (i32, i32, i32) {
    %c0_i32 = arith.constant 0 : i32
    %c0_i32_0 = arith.constant 0 : i32
    %c0_i32_1 = arith.constant 0 : i32
    return %arg0, %c0_i32, %c0_i32_0 : i32, i32, i32
  }
  func.func @transform_6(%arg0: i32, %arg1: i32) -> (i32, i32, i32) {
    %c0_i32 = arith.constant 0 : i32
    %c0_i32_0 = arith.constant 0 : i32
    %c0_i32_1 = arith.constant 0 : i32
    return %arg0, %c0_i32, %c0_i32_0 : i32, i32, i32
  }
  func.func @transform_7(%arg0: i32, %arg1: i32) -> (i32, i32, i32) {
    %c0_i32 = arith.constant 0 : i32
    %c0_i32_0 = arith.constant 0 : i32
    %c0_i32_1 = arith.constant 0 : i32
    return %arg0, %c0_i32, %c0_i32_0 : i32, i32, i32
  }
  func.func @transform_8(%arg0: i32, %arg1: i32) -> (i32, i32, i32) {
    %c0_i32 = arith.constant 0 : i32
    %c0_i32_0 = arith.constant 0 : i32
    %c0_i32_1 = arith.constant 0 : i32
    return %arg0, %c0_i32, %c0_i32_0 : i32, i32, i32
  }
  func.func @transform_9(%arg0: i32, %arg1: i32) -> (i32, i32, i32) {
    %c0_i32 = arith.constant 0 : i32
    %c0_i32_0 = arith.constant 0 : i32
    return %arg0, %arg1, %c0_i32 : i32, i32, i32
  }
}

</mosaic_0001>

<bundles_post_ra>
// kernel: q_critic_forward.1
= control target key start
LH: loop header
LB: loop body
LE: loop exit
PB: predicated region body
PF: predicated region fallthrough
CT: control target
= control target key end

     0   :  { %s875_s0 = inlined_call_operand.hbm [shape: f32[8,24], index: 0, kind: input, shape index: {}]   ;;  %s876_s1 = inlined_call_operand.hbm [shape: f32[8,8], index: 1, kind: input, shape index: {}]   ;;  %s877_s2 = inlined_call_operand.vmem [shape: bf16[1,24,128], index: 2, kind: input, shape index: {}]   ;;  %s878_s3 = inlined_call_operand.vmem [shape: bf16[1,8,128], index: 3, kind: input, shape index: {}]   ;;  %s879_s4 = inlined_call_operand.hbm [shape: f32[1,1,128], index: 4, kind: input, shape index: {}]   ;;  %s880_s5 = inlined_call_operand.hbm [shape: bf16[1,128,384], index: 5, kind: input, shape index: {}]   ;;  %s881_s6 = inlined_call_operand.vmem [shape: f32[1,1,384], index: 6, kind: input, shape index: {}]   ;;  %s882_s7 = inlined_call_operand.vmem [shape: f32[1,1,384], index: 7, kind: input, shape index: {}]   ;;  %s883_s8 = inlined_call_operand.<no memory space> [shape: f32[1,1,1], index: 8, kind: input, shape index: {}]   ;;  %s884_s9 = inlined_call_operand.vmem [shape: f32[1,8,1], index: 9, kind: output, shape index: {}]  }
   0x1   :  { %v14_v0 = vstv %s883_s8 }
   0x2   :  { %15 = vst [vmem:[#allocation2] sm:$0x1] %v14_v0 }
   0x3   :  { %16 = vsyncpa [#allocation4], 0 }
   0x4   :  { %17 = vsyncpa [#allocation6], 0 }
   0x5   :  { %18 = vsyncpa [#allocation9], 0  ;;  %s723_s11 = smov [#allocation5]   ;;  %s724_s13 = smov [#allocation3]  }
   0x6   :  { %s35_s12 = sshll.u32 %s723_s11, 4  ;;  %s25_s14 = sshll.u32 %s724_s13, 4  ;;  %s36_s12 = int_to_ptr.vmem [resolvable:$true] %s35_s12  ;;  %s26_s14 = int_to_ptr.vmem [resolvable:$true] %s25_s14 }
   0x7   :  { %s629_s17 = scalar_lea.hbm %s876_s1, 128 }
   0x8   :  { %p630_p0 = scmp.ne.s32.totalorder %s876_s1, %s629_s17  ;;  %p633_p1 = scmp.lt.u32.totalorder %s629_s17, %s876_s1 }
   0xa   :  { %p635_p2 = pnand %p633_p1, %p630_p0 }
   0xc   :  { %638 = shalt.err (!%p635_p2)
}
   0xd   :  { %s639_s21 = scalar_lea.vmem %s36_s12, 128  ;;  %p644_p4 = scmp.lt.s32.totalorder %s36_s12, %s36_s12 }
   0xe   :  { %p640_p3 = scmp.ne.s32.totalorder %s36_s12, %s639_s21  ;;  %p645_p5 = scmp.lt.s32.totalorder %s639_s21, %s639_s21 }
  0x10   :  { %p646_p6 = por %p645_p5, %p644_p4 }
  0x12   :  { %p647_p7 = pnand %p646_p6, %p640_p3 }
  0x14   :  { %650 = shalt.err (!%p647_p7)
}
  0x15   :  { %38 = dma.hbm_to_vmem [thread:$0]  %s876_s1, 128, %s36_s12, [#allocation6]  }
  0x16   :  { %s651_s26 = scalar_lea.hbm %s875_s0, 128 }
  0x17   :  { %p652_p8 = scmp.ne.s32.totalorder %s875_s0, %s651_s26  ;;  %p655_p9 = scmp.lt.u32.totalorder %s651_s26, %s875_s0 }
  0x19   :  { %p657_p10 = pnand %p655_p9, %p652_p8 }
  0x1b   :  { %660 = shalt.err (!%p657_p10)
}
  0x1c   :  { %s661_s10 = scalar_lea.vmem %s26_s14, 128  ;;  %p666_p12 = scmp.lt.s32.totalorder %s26_s14, %s26_s14 }
  0x1d   :  { %p662_p11 = scmp.ne.s32.totalorder %s26_s14, %s661_s10  ;;  %p667_p13 = scmp.lt.s32.totalorder %s661_s10, %s661_s10 }
  0x1f   :  { %p668_p0 = por %p667_p13, %p666_p12 }
  0x21   :  { %p669_p1 = pnand %p668_p0, %p662_p11 }
  0x23   :  { %672 = shalt.err (!%p669_p1)
}
  0x24   :  { %28 = dma.hbm_to_vmem [thread:$0]  %s875_s0, 128, %s26_s14, [#allocation4]  }
  0x25   :  { %s725_s12 = smov [#allocation7]   ;;  %s726_s15 = smov [#allocation8]  }
  0x26   :  { %s49_s13 = sshll.u32 %s725_s12, 4  ;;  %s58_s16 = sshll.u32 %s726_s15, 4  ;;  %s50_s13 = int_to_ptr.vmem [resolvable:$true] %s49_s13  ;;  %s809_s16 = int_to_ptr.vmem [resolvable:$true] %s58_s16 }
  0x27   :  { %s673_s19 = scalar_lea.hbm %s879_s4, 16 }
  0x28   :  { %p674_p2 = scmp.ne.s32.totalorder %s879_s4, %s673_s19  ;;  %p677_p3 = scmp.lt.u32.totalorder %s673_s19, %s879_s4 }
  0x2a   :  { %p679_p4 = pnand %p677_p3, %p674_p2 }
  0x2c   :  { %682 = shalt.err (!%p679_p4)
}
  0x2d   :  { %s683_s0 = scalar_lea.vmem %s50_s13, 16  ;;  %s687_s14 = scalar_lea.vmem %s50_s13, 32 }
  0x2e   :  { %p684_p5 = scmp.ne.s32.totalorder %s50_s13, %s683_s0  ;;  %p688_p6 = scmp.lt.s32.totalorder %s50_s13, %s50_s13 }
  0x2f   :  { %p689_p7 = scmp.lt.s32.totalorder %s687_s14, %s683_s0 }
  0x31   :  { %p690_p8 = por %p689_p7, %p688_p6 }
  0x33   :  { %p691_p9 = pnand %p690_p8, %p684_p5 }
  0x35   :  { %694 = shalt.err (!%p691_p9)
}
  0x36   :  { %52 = dma.hbm_to_vmem [thread:$0]  %s879_s4, 16, %s50_s13, [#allocation6]  }
  0x37   :  { %s695_s27 = scalar_lea.hbm %s880_s5, 3072 }
  0x38   :  { %p696_p10 = scmp.ne.s32.totalorder %s880_s5, %s695_s27  ;;  %p699_p11 = scmp.lt.u32.totalorder %s695_s27, %s880_s5 }
  0x3a   :  { %p701_p12 = pnand %p699_p11, %p696_p10 }
  0x3c   :  { %704 = shalt.err (!%p701_p12)
}
  0x3d   :  { %s705_s1 = scalar_lea.vmem %s809_s16, 3072  ;;  %p710_p0 = scmp.lt.s32.totalorder %s809_s16, %s809_s16 }
  0x3e   :  { %p706_p13 = scmp.ne.s32.totalorder %s809_s16, %s705_s1  ;;  %p711_p1 = scmp.lt.s32.totalorder %s705_s1, %s705_s1 }
  0x40   :  { %p712_p2 = por %p711_p1, %p710_p0 }
  0x42   :  { %p713_p3 = pnand %p712_p2, %p706_p13 }
  0x44   :  { %716 = shalt.err (!%p713_p3)
}
  0x45   :  { %s727_s4 = smov 192   ;;  %s728_s11 = smov 12  }
  0x46   :  { %64 = dma.hbm_to_vmem [thread:$0]  %s880_s5, 3072, %s809_s16, [#allocation9], %s727_s4, %s727_s4, %s728_s11  }
  0x47   :  { %717 = dma.done.wait [#allocation4], 128  }
  0x48   :  { %718 = vsyncadd [#allocation4], 4294967168 }
  0x49   :  { %719 = dma.done.wait [#allocation6], 144  }
  0x4a   :  { %720 = vsyncadd [#allocation6], 4294967152 }
  0x4b   :  { %721 = dma.done.wait [#allocation9], 3072  }
  0x4c   :  { %722 = vsyncadd [#allocation9], 4294964224  ;;  %v729_v1 = vmov 0.0   ;;  %vm730_vm0 = vmmov 0   ;;  %vm96_vm1 = vcmask 1043456   ;;  %v595_v2 = vld [vmem:[%s877_s2] sm:$0xff]   ;;  %v240_v49 = vlaneseq }
  0x4d   :  { %558 = vmatprep.subr.bf16.mxu1 %v729_v1  ;;  %552 = vmatprep.subr.bf16.mxu0 %v729_v1  ;;  %v91_v3 = vld [vmem:[%s878_s3] sm:$0xf]  ;;  %v86_v4 = vld [vmem:[#allocation5] sm:$0xff]  ;;  %v596_v7 = vld [vmem:[%s877_s2 + $0x8] ss:$0 sps:$4 sm:$0xff]   ;;  %vm92_vm2 = vcmask 64512  }
  0x4e   :  { %554 = vmatprep.mubr.msk.bf16.mxu0 %vm730_vm0, %v729_v1  ;;  %562 = vmatprep.mubr.msk.bf16.mxu1 %vm730_vm0, %v729_v1  ;;  %v98_v5 = vsel %vm96_vm1, %v91_v3, 0  ;;  %v87_v6 = vpack.c.bf16 %v86_v4, %v86_v4  ;;  %v84_v8 = vld [vmem:[#allocation3] sm:$0xff]  ;;  %v154_v11 = vsel %vm96_vm1, %v596_v7, 0  ;;  %vm149_vm3 = vcmask 195584   ;;  %v603_v14 = vld [vmem:[#allocation8 + $0x1c] ss:$12 sps:$4 sm:$0xff]  }
  0x4f   :  { %559 = vmatpush3.bf16.msra.mxu1 %v595_v2  ;;  %553 = vmatpush3.bf16.msra.mxu0 %v98_v5  ;;  %v597_v9 = vld [vmem:[#allocation8] ss:$12 sps:$4 sm:$0xff]   ;;  %v599_v10 = vld [vmem:[#allocation8 + $0x4] ss:$12 sps:$4 sm:$0xff]   ;;  %v85_v12 = vpack.c.bf16 %v84_v8, %v84_v8  ;;  %v600_v13 = vld [vmem:[#allocation8 + $0x8] ss:$12 sps:$4 sm:$0xff]  }
  0x50   :  { %560 = vmatprep.subr.bf16.mxu1 %v729_v1  ;;  %383 = vmatprep.subr.bf16.mxu0 %v599_v10  ;;  %v601_v15 = vld [vmem:[#allocation8 + $0x18] ss:$12 sps:$4 sm:$0xff]   ;;  %v607_v16 = vld [vmem:[#allocation8 + $0x34] ss:$12 sps:$4 sm:$0xff]   ;;  %v605_v18 = vld [vmem:[#allocation8 + $0x30] ss:$12 sps:$4 sm:$0xff]  }
  0x51   :  { %v604_v17 = vld [vmem:[#allocation8 + $0x20] ss:$12 sps:$4 sm:$0xff]   ;;  %v608_v19 = vld [vmem:[#allocation8 + $0x38] ss:$12 sps:$4 sm:$0xff]   ;;  %v609_v21 = vld [vmem:[#allocation8 + $0x48] ss:$12 sps:$4 sm:$0xff]  }
  0x52   :  { %555 = vmatmul.mubr.msk.bf16.vlgmr.msra.gmra.mrb[0].mxu0 %vm92_vm2, %v87_v6  ;;  %v611_v20 = vld [vmem:[#allocation8 + $0x4c] ss:$12 sps:$4 sm:$0xff]   ;;  %v615_v22 = vld [vmem:[#allocation8 + $0x64] ss:$12 sps:$4 sm:$0xff]   ;;  %v616_v25 = vld [vmem:[#allocation8 + $0x68] ss:$12 sps:$4 sm:$0xff]  }
  0x53   :  { %561 = vmatpush3.bf16.msra.mxu1 %v154_v11  ;;  %384 = vmatpush1.bf16.msra.mxu0 %v597_v9  ;;  %v612_v23 = vld [vmem:[#allocation8 + $0x50] ss:$12 sps:$4 sm:$0xff]   ;;  %v613_v24 = vld [vmem:[#allocation8 + $0x60] ss:$12 sps:$4 sm:$0xff]   ;;  %v617_v27 = vld [vmem:[#allocation8 + $0x78] ss:$12 sps:$4 sm:$0xff]  }
  0x54   :  { %566 = vmatprep.subr.bf16.mxu1 %v729_v1  ;;  %385 = vmatprep.subr.bf16.mxu0 %v603_v14  ;;  %v619_v26 = vld [vmem:[#allocation8 + $0x7c] ss:$12 sps:$4 sm:$0xff]   ;;  %v620_v28 = vld [vmem:[#allocation8 + $0x80] ss:$12 sps:$4 sm:$0xff]   ;;  %v624_v31 = vld [vmem:[#allocation8 + $0x98] ss:$12 sps:$4 sm:$0xff]  }
  0x55   :  { %v623_v29 = vld [vmem:[#allocation8 + $0x94] ss:$12 sps:$4 sm:$0xff]   ;;  %v621_v30 = vld [vmem:[#allocation8 + $0x90] ss:$12 sps:$4 sm:$0xff]   ;;  %v627_v32 = vld [vmem:[#allocation8 + $0xac] ss:$12 sps:$4 sm:$0xff]  }
  0x56   :  { %563 = vmatmul.mubr.msk.bf16.vlgmr.msra.gmra.mrb[0].mxu1 %vm149_vm3, %v85_v12  ;;  %v625_v33 = vld [vmem:[#allocation8 + $0xa8] ss:$12 sps:$4 sm:$0xff]   ;;  %v628_v34 = vld [vmem:[#allocation8 + $0xb0] ss:$12 sps:$4 sm:$0xff]   ;;  %v731_v35 = vmov 0   ;;  %v241_v50 = vshrl.u32 %v240_v49, 7 }
  0x57   :  { %567 = vmatpush3.bf16.msra.mxu1 %v600_v13  ;;  %582 = vmatprep.mubr.msk.bf16.mxu1 %vm730_vm0, %v729_v1  ;;  %v512_v41 = vld [vmem:[#allocation7] ss:$0 sm:$0xff]  ;;  %v238_v53 = vld [vmem:[%s881_s6] sm:$0x7]  ;;  %vm499_vm4 = vcmask 7168  }
  0x58   :  { %568 = vmatprep.subr.bf16.mxu1 %v729_v1  ;;  %386 = vmatpush1.bf16.msra.mxu0 %v601_v15  ;;  %v242_v51 = vsub.s32 0, %v241_v50  ;;  %v250_v52 = vsub.s32 2, %v241_v50  ;;  %v246_v54 = vsub.s32 1, %v241_v50  ;;  %v467_v57 = vld [vmem:[%s882_s7] sm:$0x7] }
  0x59   :  { %387 = vmatprep.subr.bf16.mxu0 %v607_v16  ;;  %415 = vmatprep.mubr.bf16.mxu0 %v731_v35 }
  0x5a   :  { %v243_v55 = vrot.slane %v238_v53, %v242_v51  ;;  %v251_v56 = vrot.slane %v238_v53, %v250_v52  ;;  %v247_v58 = vrot.slane %v238_v53, %v246_v54  ;;  %v472_v62 = vrot.slane %v467_v57, %v242_v51 }
  0x5b   :  { %569 = vmatpush3.bf16.msra.mxu1 %v604_v17  ;;  %v476_v3 = vrot.slane %v467_v57, %v246_v54  ;;  %v480_v11 = vrot.slane %v467_v57, %v250_v52  ;;  %v537_v17 = vld [vmem:[#allocation2] ss:$0 sm:$0xff] }
  0x5c   :  { %570 = vmatprep.subr.bf16.mxu1 %v729_v1  ;;  %388 = vmatpush1.bf16.msra.mxu0 %v605_v18 }
  0x5d   :  { %389 = vmatprep.subr.bf16.mxu0 %v611_v20 }
  0x5f   :  { %571 = vmatpush3.bf16.msra.mxu1 %v608_v19 }
  0x60   :  { %572 = vmatprep.subr.bf16.mxu1 %v729_v1  ;;  %390 = vmatpush1.bf16.msra.mxu0 %v609_v21 }
  0x61   :  { %391 = vmatprep.subr.bf16.mxu0 %v615_v22 }
  0x63   :  { %573 = vmatpush3.bf16.msra.mxu1 %v612_v23 }
  0x64   :  { %574 = vmatprep.subr.bf16.mxu1 %v729_v1  ;;  %392 = vmatpush1.bf16.msra.mxu0 %v613_v24 }
  0x65   :  { %393 = vmatprep.subr.bf16.mxu0 %v619_v26 }
  0x67   :  { %575 = vmatpush3.bf16.msra.mxu1 %v616_v25 }
  0x68   :  { %576 = vmatprep.subr.bf16.mxu1 %v729_v1  ;;  %394 = vmatpush1.bf16.msra.mxu0 %v617_v27 }
  0x69   :  { %395 = vmatprep.subr.bf16.mxu0 %v623_v29 }
  0x6b   :  { %577 = vmatpush3.bf16.msra.mxu1 %v620_v28 }
  0x6c   :  { %578 = vmatprep.subr.bf16.mxu1 %v729_v1  ;;  %396 = vmatpush1.bf16.msra.mxu0 %v621_v30 }
  0x6d   :  { %397 = vmatprep.subr.bf16.mxu0 %v627_v32 }
  0x6f   :  { %579 = vmatpush3.bf16.msra.mxu1 %v624_v31 }
  0x70   :  { %580 = vmatprep.subr.bf16.mxu1 %v729_v1  ;;  %398 = vmatpush1.bf16.msra.mxu0 %v625_v33 }
  0x73   :  { %581 = vmatpush3.bf16.msra.mxu1 %v628_v34 }
 0x125   :  { %v134_v36 = vpop.f32.mrb[0].mxu0 }
 0x126   :  { %v556_v37 = vpop.f32.mrb[1].mxu0 }
 0x127   :  { %v137_v38 = vpop.f32.mrb[2].mxu0 }
 0x128   :  { %v557_v39 = vpop.f32.mrb[3].mxu0 }
 0x129   :  { %v190_v40 = vpop.f32.mrb[0].mxu1 }
 0x12a   :  { %v191_v42 = vadd.f32 %v190_v40, %v134_v36  ;;  %v564_v43 = vpop.f32.mrb[1].mxu1 }
 0x12b   :  { %v193_v44 = vpop.f32.mrb[2].mxu1 }
 0x12c   :  { %v203_v45 = vadd.f32 %v512_v41, %v191_v42  ;;  %v565_v46 = vpop.f32.mrb[3].mxu1 }
 0x12e   :  { %v204_v47 = vmax.f32 %v203_v45, 0.0 }
 0x130   :  { %v205_v48 = vpack.c.bf16 %v204_v47, %v204_v47 }
 0x132   :  { %416 = vmatmul.mubr.bf16.vlgmr.msra.gmra.mrb[4].mxu0 %v205_v48  ;;  %583 = vmatmul.mubr.bf16.vlgmr.msra.gmra.mrb[4].mxu1 %v205_v48 }
 0x205   :  { %v417_v59 = vpop.f32.mrb[4].mxu0  ;;  %v458_v60 = vpop.f32.mrb[4].mxu1 }
 0x206   :  { %v418_v61 = vadd.f32 %v417_v59, %v243_v55  ;;  %v459_v63 = vadd.f32 %v458_v60, %v251_v56  ;;  %v419_v0 = vpop.f32.mrb[5].mxu0  ;;  %v584_v1 = vpop.f32.mrb[5].mxu1 }
 0x207   :  { %v420_v2 = vadd.f32 %v419_v0, %v247_v58  ;;  %v421_v4 = vpop.f32.mrb[6].mxu0  ;;  %v461_v5 = vpop.f32.mrb[6].mxu1 }
 0x208   :  { %v464_v6 = vmax.f32 %v418_v61, 0.0  ;;  %v422_v7 = vpop.f32.mrb[7].mxu0  ;;  %v585_v8 = vpop.f32.mrb[7].mxu1  ;;  %v466_v9 = vmax.f32 %v459_v63, 0.0 }
 0x209   :  { %v465_v10 = vmax.f32 %v420_v2, 0.0 }
 0x20a   :  { %v484_v12 = vmul.f32 %v472_v62, %v464_v6  ;;  %v486_v14 = vmul.f32 %v480_v11, %v466_v9 }
 0x20b   :  { %v485_v13 = vmul.f32 %v476_v3, %v465_v10 }
 0x20d   :  { %v487_v15 = vadd.f32 %v485_v13, %v484_v12 }
 0x20f   :  { %v488_v16 = vadd.f32 %v487_v15, %v486_v14 }
 0x211   :  { %489 = vadd.xlane.f32.xlu0 %v488_v16 }
 0x29e   :  { %v490_v18 = vpop.xlane.xlu0 %489 }
 0x29f   :  { %v498_v19 = vadd.f32 %v537_v17, %v490_v18 }
 0x2a1   :  { %500 = vst.msk [vmem:[%s884_s9] sm:$0xff] %vm499_vm4, %v498_v19 }
 0x2a2   :  { %505 = vsyncpa [#allocation4], 1 }
 0x2a3   :  { %506 = vsyncpa [#allocation6], 1 }
 0x2a4   :  { %507 = vsyncpa [#allocation9], 1 }

</bundles_post_ra>
